<compile_context>
chip_gen: v7x
topology: tpu7x:2x2x1
jax: 0.10.0
libtpu: 0.0.40
codegen_flags: <defaults>
</compile_context>

<pallas_src>
import jax
import jax.numpy as jnp
from jax.experimental import pallas as pl
from jax.experimental.pallas import tpu as pltpu


def scse_kernel(x_ref, cse_ref, ws_ref, bs_ref, o_ref):
    """One (Bt, C, THW) tile: out = x * (cSE + sSE)."""
    x = x_ref[...]                                   # (Bt, C, THW)
    xf = x.astype(jnp.float32)                       # no-op for f32 inputs
    cse = cse_ref[...]                               # (Bt, C, 1)  f32, precomputed
    ws = ws_ref[...]                                 # (C, 1)      f32

    # sSE: per-pixel scale.  VPU multiply + reduction over the channel
    # (sublane) axis -> lane-dense (Bt, 1, THW) result (no N=1 MXU matmul).
    s = jnp.sum(xf * ws[None, :, :], axis=1, keepdims=True)      # (Bt, 1, THW)
    s = s + bs_ref[...]                                          # (1, 1) broadcast
    sse = 1.0 / (1.0 + jnp.exp(-s))                              # sigmoid

    # Fused combine: x * (cSE + sSE).
    o_ref[...] = (xf * (cse + sse)).astype(o_ref.dtype)


def _pick_tiles(B, C, HW, itemsize, target_bytes=4 * 1024 * 1024):
    """Choose (batch block, HW tile) so each DMA is big but VMEM stays bounded."""
    per_batch = C * HW * itemsize
    if per_batch <= target_bytes:
        # Whole feature map per batch; group batch elements so DMAs are large.
        want = max(1, target_bytes // per_batch)
        bt = 1
        for cand in range(min(B, want), 0, -1):
            if B % cand == 0:
                bt = cand
                break
        return bt, HW
    # Large feature map: tile HW with a multiple-of-128 divisor of HW.
    cands = [d for d in range(128, HW, 128) if HW % d == 0]
    fitting = [d for d in cands if C * d * itemsize <= target_bytes]
    if fitting:
        return 1, max(fitting)
    if cands:
        return 1, min(cands)
    return 1, HW  # fallback: full HW block (always legal)


def scse_attention(x_nchw, params):
    """x_nchw: (B, C, H, W).  Returns same shape/dtype."""
    B, C, H, W = x_nchw.shape
    HW = H * W
    w1, b1, w2, b2, ws, bs = params

    # NCHW -> (B, C, HW): pure reshape, no transpose / extra HBM pass.
    x = x_nchw.reshape(B, C, HW)
    itemsize = jnp.dtype(x.dtype).itemsize

    # --- cSE branch hoisted to the wrapper (O(B*C) flops, negligible) ---------
    pooled = jnp.mean(x.astype(jnp.float32), axis=-1)            # (B, C)
    h = jnp.maximum(pooled @ w1 + b1, 0.0)                       # (B, Cr)
    cse = jax.nn.sigmoid(h @ w2 + b2).astype(jnp.float32)        # (B, C)
    cse = cse[:, :, None]                                        # (B, C, 1)

    ws_f = ws.astype(jnp.float32)                                # (C, 1)
    bs_f = bs.astype(jnp.float32).reshape(1, 1)                  # (1, 1)

    Bt, THW = _pick_tiles(B, C, HW, itemsize)
    grid = (B // Bt, HW // THW)

    cost = pl.CostEstimate(
        flops=4 * B * C * HW,                 # mul, channel-reduce, add, mul
        transcendentals=B * HW,               # one exp per pixel (sSE sigmoid)
        bytes_accessed=2 * B * C * HW * itemsize + B * C * 4,
    )

    out = pl.pallas_call(
        scse_kernel,
        out_shape=jax.ShapeDtypeStruct((B, C, HW), x.dtype),
        grid_spec=pltpu.PrefetchScalarGridSpec(
            num_scalar_prefetch=0,
            grid=grid,
            in_specs=[
                pl.BlockSpec((Bt, C, THW), lambda b, t: (b, 0, t)),  # x tile
                pl.BlockSpec((Bt, C, 1), lambda b, t: (b, 0, 0)),    # cSE scale
                pl.BlockSpec((C, 1), lambda b, t: (0, 0)),           # w_sSE
                pl.BlockSpec((1, 1), lambda b, t: (0, 0)),           # b_sSE
            ],
            out_specs=pl.BlockSpec((Bt, C, THW), lambda b, t: (b, 0, t)),
        ),
        compiler_params=pltpu.CompilerParams(
            dimension_semantics=("parallel", "parallel"),
            vmem_limit_bytes=48 * 1024 * 1024,
        ),
        cost_estimate=cost,
    )(x, cse, ws_f, bs_f)

    # (B, C, HW) -> NCHW: pure reshape again.
    return out.reshape(B, C, H, W)


def init_params(key, C, reduction=16):
    """Deterministic synthetic weights matching SCSEModule's shapes.

    PyTorch conv weights are (out, in, 1, 1); we store them transposed as
    (in, out) matrices for matmuls / reductions.
    """
    Cr = C // reduction
    k1, k2, k3, k4, k5, k6 = jax.random.split(key, 6)
    w1 = jax.random.normal(k1, (C, Cr), jnp.float32) * 0.1   # cSE conv1: C -> Cr
    b1 = jax.random.normal(k2, (1, Cr), jnp.float32) * 0.1
    w2 = jax.random.normal(k3, (Cr, C), jnp.float32) * 0.1   # cSE conv2: Cr -> C
    b2 = jax.random.normal(k4, (1, C), jnp.float32) * 0.1
    ws = jax.random.normal(k5, (C, 1), jnp.float32) * 0.1    # sSE conv: C -> 1
    bs = jax.random.normal(k6, (1, 1), jnp.float32) * 0.1
    return w1, b1, w2, b2, ws, bs


def scse_reference(x_nchw, params):
    """Pure-JAX reference matching PyTorch SCSEModule.forward."""
    w1, b1, w2, b2, ws, bs = params
    pooled = jnp.mean(x_nchw, axis=(2, 3))                      # (B, C)
    h = jnp.maximum(pooled @ w1 + b1, 0.0)                      # (B, Cr)
    cse = jax.nn.sigmoid(h @ w2 + b2)                           # (B, C)
    cse = cse[:, :, None, None]                                 # (B, C, 1, 1)
    s = jnp.einsum('bchw,co->bohw', x_nchw, ws) + bs[0, 0]      # (B, 1, H, W)
    sse = jax.nn.sigmoid(s)
    return x_nchw * cse + x_nchw * sse


if __name__ == "__main__":
    key = jax.random.PRNGKey(0)
    kx, kp = jax.random.split(key)

    B, C, H, W = 2, 32, 16, 16          # in_channels=32, reduction=16 -> hidden=2
    x = jax.random.normal(kx, (B, C, H, W), jnp.float32)
    params = init_params(kp, C, reduction=16)

    out = jax.block_until_ready(scse_attention(x, params))
    ref = scse_reference(x, params)

    assert out.shape == x.shape and out.dtype == x.dtype
    assert jnp.allclose(out, ref, atol=1e-5, rtol=1e-5), "mismatch vs reference"

    print("KERNEL_OK")
</pallas_src>

<mosaic_0001>
module attributes {stable_mosaic.version = 11 : i64} {
  func.func @scse_kernel(%arg0: i32, %arg1: i32, %arg2: memref<2x32x256xf32, #tpu.memory_space<vmem>>, %arg3: memref<2x32x1xf32, #tpu.memory_space<vmem>>, %arg4: memref<32x1xf32, #tpu.memory_space<vmem>>, %arg5: memref<1x1xf32, #tpu.memory_space<vmem>>, %arg6: memref<2x32x256xf32, #tpu.memory_space<vmem>>) attributes {dimension_semantics = [#tpu.dimension_semantics<parallel>, #tpu.dimension_semantics<parallel>], iteration_bounds = array<i64: 1, 1>, scalar_prefetch = 0 : i64, scratch_operands = 0 : i64, tpu.core_type = #tpu.core_type<tc>, window_params = [{transform_indices = @transform_0, window_bounds = array<i64: 2, 32, 256>}, {transform_indices = @transform_1, window_bounds = array<i64: 2, 32, 1>}, {pipeline_mode = #tpu.pipeline_mode<synchronous>, transform_indices = @transform_2, window_bounds = array<i64: 32, 1>}, {pipeline_mode = #tpu.pipeline_mode<synchronous>, transform_indices = @transform_3, window_bounds = array<i64: 1, 1>}, {transform_indices = @transform_4, window_bounds = array<i64: 2, 32, 256>}]} {
    %c0 = arith.constant 0 : index
    %c0_0 = arith.constant 0 : index
    %c0_1 = arith.constant 0 : index
    %0 = vector.load %arg2[%c0, %c0_0, %c0_1] : memref<2x32x256xf32, #tpu.memory_space<vmem>>, vector<2x32x256xf32>
    %c0_2 = arith.constant 0 : index
    %c0_3 = arith.constant 0 : index
    %c0_4 = arith.constant 0 : index
    %1 = vector.load %arg3[%c0_2, %c0_3, %c0_4] : memref<2x32x1xf32, #tpu.memory_space<vmem>>, vector<2x32x1xf32>
    %c0_5 = arith.constant 0 : index
    %c0_6 = arith.constant 0 : index
    %2 = vector.load %arg4[%c0_5, %c0_6] : memref<32x1xf32, #tpu.memory_space<vmem>>, vector<32x1xf32>
    %3 = vector.shape_cast %2 : vector<32x1xf32> to vector<1x32x1xf32>
    %4 = vector.broadcast %3 : vector<1x32x1xf32> to vector<2x32x256xf32>
    %5 = arith.mulf %0, %4 : vector<2x32x256xf32>
    %cst = arith.constant dense<0.000000e+00> : vector<2x256xf32>
    %6 = vector.multi_reduction <add>, %5, %cst [1] : vector<2x32x256xf32> to vector<2x256xf32>
    %7 = vector.shape_cast %6 : vector<2x256xf32> to vector<2x1x256xf32>
    %c0_7 = arith.constant 0 : index
    %c0_8 = arith.constant 0 : index
    %8 = vector.load %arg5[%c0_7, %c0_8] : memref<1x1xf32, #tpu.memory_space<vmem>>, vector<1x1xf32>
    %9 = vector.shape_cast %8 : vector<1x1xf32> to vector<1x1x1xf32>
    %10 = vector.broadcast %9 : vector<1x1x1xf32> to vector<2x1x256xf32>
    %11 = arith.addf %7, %10 : vector<2x1x256xf32>
    %cst_9 = arith.constant 0.000000e+00 : f32
    %12 = vector.broadcast %cst_9 : f32 to vector<2x1x256xf32>
    %13 = arith.subf %12, %11 : vector<2x1x256xf32>
    %14 = math.exp %13 : vector<2x1x256xf32>
    %cst_10 = arith.constant 1.000000e+00 : f32
    %15 = vector.broadcast %cst_10 : f32 to vector<2x1x256xf32>
    %16 = arith.addf %15, %14 : vector<2x1x256xf32>
    %cst_11 = arith.constant 1.000000e+00 : f32
    %17 = vector.broadcast %cst_11 : f32 to vector<2x1x256xf32>
    %18 = arith.divf %17, %16 : vector<2x1x256xf32>
    %19 = vector.broadcast %1 : vector<2x32x1xf32> to vector<2x32x256xf32>
    %20 = vector.broadcast %18 : vector<2x1x256xf32> to vector<2x32x256xf32>
    %21 = arith.addf %19, %20 : vector<2x32x256xf32>
    %22 = arith.mulf %0, %21 : vector<2x32x256xf32>
    %c0_12 = arith.constant 0 : index
    %c0_13 = arith.constant 0 : index
    %c0_14 = arith.constant 0 : index
    %23 = vector.load %arg6[%c0_12, %c0_13, %c0_14] : memref<2x32x256xf32, #tpu.memory_space<vmem>>, vector<2x32x256xf32>
    tpu.vector_store %arg6[%c0_12, %c0_13, %c0_14], %22 {strides = array<i32>} : memref<2x32x256xf32, #tpu.memory_space<vmem>>, vector<2x32x256xf32>,
    return
  }
  func.func @transform_0(%arg0: i32, %arg1: i32) -> (i32, i32, i32) {
    %c0_i32 = arith.constant 0 : i32
    %c0_i32_0 = arith.constant 0 : i32
    return %arg0, %c0_i32, %arg1 : i32, i32, i32
  }
  func.func @transform_1(%arg0: i32, %arg1: i32) -> (i32, i32, i32) {
    %c0_i32 = arith.constant 0 : i32
    %c0_i32_0 = arith.constant 0 : i32
    %c0_i32_1 = arith.constant 0 : i32
    return %arg0, %c0_i32, %c0_i32_0 : i32, i32, i32
  }
  func.func @transform_2(%arg0: i32, %arg1: i32) -> (i32, i32) {
    %c0_i32 = arith.constant 0 : i32
    %c0_i32_0 = arith.constant 0 : i32
    %c0_i32_1 = arith.constant 0 : i32
    return %c0_i32, %c0_i32_0 : i32, i32
  }
  func.func @transform_3(%arg0: i32, %arg1: i32) -> (i32, i32) {
    %c0_i32 = arith.constant 0 : i32
    %c0_i32_0 = arith.constant 0 : i32
    %c0_i32_1 = arith.constant 0 : i32
    return %c0_i32, %c0_i32_0 : i32, i32
  }
  func.func @transform_4(%arg0: i32, %arg1: i32) -> (i32, i32, i32) {
    %c0_i32 = arith.constant 0 : i32
    %c0_i32_0 = arith.constant 0 : i32
    return %arg0, %c0_i32, %arg1 : i32, i32, i32
  }
}

</mosaic_0001>

<bundles_post_ra>
// kernel: tpu_custom_call.1
= control target key start
LH: loop header
LB: loop body
LE: loop exit
PB: predicated region body
PF: predicated region fallthrough
CT: control target
= control target key end

     0   :  { %s511_s0 = inlined_call_operand.hbm [shape: f32[2,32,256], index: 0, kind: input, shape index: {}]   ;;  %s512_s1 = inlined_call_operand.vmem [shape: f32[2,32,1], index: 1, kind: input, shape index: {}]   ;;  %s513_s2 = inlined_call_operand.vmem [shape: f32[32,1], index: 2, kind: input, shape index: {}]   ;;  %s514_s3 = inlined_call_operand.<no memory space> [shape: f32[1,1], index: 3, kind: input, shape index: {}]   ;;  %s515_s4 = inlined_call_operand.hbm [shape: f32[2,32,256], index: 4, kind: output, shape index: {}]  }
   0x1   :  { %v9_v0 = vstv %s514_s3 }
   0x2   :  { %10 = vst [vmem:[#allocation2] sm:$0x1] %v9_v0 }
   0x3   :  { %11 = vsyncpa [#allocation4], 0 }
   0x4   :  { %12 = vsyncpa [#allocation5], 0  ;;  %s348_s17 = smov [#allocation3]   ;;  %s300_s21 = scalar_lea.hbm %s511_s0, 2048 }
   0x5   :  { %s18_s18 = sshll.u32 %s348_s17, 4  ;;  %p301_p0 = scmp.ne.s32.totalorder %s511_s0, %s300_s21  ;;  %s19_s18 = int_to_ptr.vmem [resolvable:$true] %s18_s18 }
   0x6   :  { %p304_p1 = scmp.lt.u32.totalorder %s300_s21, %s511_s0 }
   0x8   :  { %p306_p2 = pnand %p304_p1, %p301_p0 }
   0xa   :  { %309 = shalt.err (!%p306_p2)
}
   0xb   :  { %s310_s3 = scalar_lea.vmem %s19_s18, 2048  ;;  %p315_p4 = scmp.lt.s32.totalorder %s19_s18, %s19_s18 }
   0xc   :  { %p311_p3 = scmp.ne.s32.totalorder %s19_s18, %s310_s3  ;;  %p316_p5 = scmp.lt.s32.totalorder %s310_s3, %s310_s3 }
   0xe   :  { %p317_p6 = por %p316_p5, %p315_p4 }
  0x10   :  { %p318_p7 = pnand %p317_p6, %p311_p3 }
  0x12   :  { %321 = shalt.err (!%p318_p7)
}
  0x13   :  { %s349_s26 = smov 256   ;;  %s350_s27 = smov 16  }
  0x14   :  { %24 = dma.hbm_to_vmem [thread:$0]  %s511_s0, 2048, %s19_s18, [#allocation4], %s349_s26, %s349_s26, %s350_s27  }
  0x15   :  { %344 = dma.done.wait [#allocation4], 2048  }
  0x16   :  { %345 = vsyncadd [#allocation4], 4294965248  ;;  %v351_v1 = vmov 0   ;;  %v60_v2 = vld [vmem:[%s513_s2 + $0x10] sm:$0xff]  ;;  %v58_v3 = vld [vmem:[%s513_s2] sm:$0xff]  ;;  %v140_v59 = vlaneseq }
  0x17   :  { %283 = vset.pattern.permute.xlu1 %v351_v1  ;;  %282 = vset.pattern.permute.xlu0 %v351_v1  ;;  %v61_v4 = vld [vmem:[%s513_s2 + $0x18] sm:$0xff]  ;;  %v59_v5 = vld [vmem:[%s513_s2 + $0x8] sm:$0xff]  ;;  %v134_v6 = vld [vmem:[#allocation2] sm:$0x1] }
  0x18   :  { %74 = vperm.xlu1 %283, %v60_v2   ;;  %64 = vperm.xlu0 %282, %v58_v3   ;;  %v50_v7 = vld [vmem:[%s512_s1] sm:$0xff]  ;;  %v51_v8 = vld [vmem:[%s512_s1 + $0x8] sm:$0xff]  ;;  %v52_v9 = vld [vmem:[%s512_s1 + $0x10] sm:$0xff] }
  0x19   :  { %v53_v10 = vld [vmem:[%s512_s1 + $0x18] sm:$0xff]  ;;  %v54_v11 = vld [vmem:[%s512_s1 + $0x20] sm:$0xff]  ;;  %v55_v12 = vld [vmem:[%s512_s1 + $0x28] sm:$0xff] }
  0x1a   :  { %v56_v13 = vld [vmem:[%s512_s1 + $0x30] sm:$0xff]  ;;  %v57_v14 = vld [vmem:[%s512_s1 + $0x38] sm:$0xff]  ;;  %v434_v18 = vld [vmem:[#allocation3] sm:$0xff]  ;;  %s352_s1 = smov [#allocation6]  }
  0x1b   :  { %v432_v17 = vld [vmem:[#allocation3 + $0x10] sm:$0xff]  ;;  %v436_v19 = vld [vmem:[#allocation3 + $0x20] sm:$0xff]  ;;  %v438_v20 = vld [vmem:[#allocation3 + $0x8] sm:$0xff]  ;;  %s265_s3 = sshll.u32 %s352_s1, 4  ;;  %s266_s3 = int_to_ptr.vmem [resolvable:$true] %s265_s3 }
  0x1c   :  { %79 = vperm.xlu1 %283, %v61_v4   ;;  %69 = vperm.xlu0 %282, %v59_v5   ;;  %v440_v21 = vld [vmem:[#allocation3 + $0x40] sm:$0xff]  ;;  %v442_v22 = vld [vmem:[#allocation3 + $0x48] sm:$0xff]  ;;  %v444_v23 = vld [vmem:[#allocation3 + $0x18] sm:$0xff]  ;;  %v141_v4 = vshrl.u32 %v140_v59, 7  ;;  %s322_s28 = scalar_lea.vmem %s266_s3, 2048  ;;  %p327_p9 = scmp.lt.s32.totalorder %s266_s3, %s266_s3 }
  0x1d   :  { %v446_v24 = vld [vmem:[#allocation3 + $0x50] sm:$0xff]  ;;  %v448_v25 = vld [vmem:[#allocation3 + $0x58] sm:$0xff]  ;;  %v450_v26 = vld [vmem:[#allocation3 + $0x28] sm:$0xff]  ;;  %p323_p8 = scmp.ne.s32.totalorder %s266_s3, %s322_s28  ;;  %p328_p10 = scmp.lt.s32.totalorder %s322_s28, %s322_s28 }
  0x1e   :  { %v452_v27 = vld [vmem:[#allocation3 + $0x60] sm:$0xff]  ;;  %v454_v28 = vld [vmem:[#allocation3 + $0x68] sm:$0xff]  ;;  %v456_v30 = vld [vmem:[#allocation3 + $0x30] sm:$0xff] }
  0x1f   :  { %v462_v36 = vld [vmem:[#allocation3 + $0x38] sm:$0xff]  ;;  %v464_v37 = vld [vmem:[#allocation3 + $0x70] sm:$0xff]  ;;  %p329_p11 = por %p328_p10, %p327_p9 }
  0x20   :  { %137 = vperm.xlu0 %282, %v134_v6   ;;  %174 = vperm.xlu1 %283, %v50_v7   ;;  %v466_v38 = vld [vmem:[#allocation3 + $0x78] sm:$0xff] }
  0x21   :  { %p330_p12 = pnand %p329_p11, %p323_p8 }
  0x24   :  { %179 = vperm.xlu0 %282, %v51_v8   ;;  %184 = vperm.xlu1 %283, %v52_v9  }
  0x28   :  { %189 = vperm.xlu0 %282, %v53_v10   ;;  %194 = vperm.xlu1 %283, %v54_v11  }
  0x2c   :  { %199 = vperm.xlu0 %282, %v55_v12   ;;  %204 = vperm.xlu1 %283, %v56_v13   ;;  %v142_v13 = vsub.s32 0, %v141_v4 }
  0x30   :  { %209 = vperm.xlu0 %282, %v57_v14  }
  0x97   :  { %v75_v15 = vpop.permute.xlu1 %74  ;;  %v65_v16 = vpop.permute.xlu0 %64 }
  0x98   :  { %v82_v31 = vmul.f32 %v65_v16, %v434_v18  ;;  %v83_v32 = vmul.f32 %v65_v16, %v438_v20  ;;  %v90_v33 = vmul.f32 %v65_v16, %v440_v21  ;;  %v91_v34 = vmul.f32 %v65_v16, %v442_v22 }
  0x99   :  { %v86_v43 = vmul.f32 %v75_v15, %v436_v19  ;;  %v87_v44 = vmul.f32 %v75_v15, %v450_v26  ;;  %v94_v45 = vmul.f32 %v75_v15, %v452_v27  ;;  %v95_v46 = vmul.f32 %v75_v15, %v454_v28 }
  0x9b   :  { %v70_v29 = vpop.permute.xlu0 %69  ;;  %v80_v35 = vpop.permute.xlu1 %79 }
  0x9c   :  { %v84_v39 = vmul.f32 %v70_v29, %v432_v17  ;;  %v85_v40 = vmul.f32 %v70_v29, %v444_v23  ;;  %v92_v41 = vmul.f32 %v70_v29, %v446_v24  ;;  %v93_v42 = vmul.f32 %v70_v29, %v448_v25 }
  0x9d   :  { %v88_v51 = vmul.f32 %v80_v35, %v456_v30  ;;  %v89_v52 = vmul.f32 %v80_v35, %v462_v36  ;;  %v96_v53 = vmul.f32 %v80_v35, %v464_v37  ;;  %v97_v54 = vmul.f32 %v80_v35, %v466_v38 }
  0x9e   :  { %v98_v47 = vadd.f32 %v84_v39, %v82_v31  ;;  %v107_v48 = vadd.f32 %v85_v40, %v83_v32  ;;  %v116_v49 = vadd.f32 %v92_v41, %v90_v33  ;;  %v125_v50 = vadd.f32 %v93_v42, %v91_v34 }
  0x9f   :  { %v138_v14 = vpop.permute.xlu0 %137 }
  0xa0   :  { %v99_v55 = vadd.f32 %v98_v47, %v86_v43  ;;  %v108_v56 = vadd.f32 %v107_v48, %v87_v44  ;;  %v117_v57 = vadd.f32 %v116_v49, %v94_v45  ;;  %v126_v58 = vadd.f32 %v125_v50, %v95_v46 }
  0xa1   :  { %v143_v39 = vrot.slane %v138_v14, %v142_v13 }
  0xa2   :  { %v100_v60 = vadd.f32 %v99_v55, %v88_v51  ;;  %v109_v61 = vadd.f32 %v108_v56, %v89_v52  ;;  %v118_v62 = vadd.f32 %v117_v57, %v96_v53  ;;  %v127_v63 = vadd.f32 %v126_v58, %v97_v54  ;;  %v175_v57 = vpop.permute.xlu1 %174 }
  0xa3   :  { %v180_v58 = vpop.permute.xlu0 %179 }
  0xa4   :  { %v101_v0 = vrot.slane %v100_v60, 4  ;;  %v110_v1 = vrot.slane %v109_v61, 4  ;;  %v119_v2 = vrot.slane %v118_v62, 4  ;;  %v128_v3 = vrot.slane %v127_v63, 4 }
  0xa6   :  { %v102_v5 = vadd.f32 %v101_v0, %v100_v60  ;;  %v111_v6 = vadd.f32 %v110_v1, %v109_v61  ;;  %v120_v7 = vadd.f32 %v119_v2, %v118_v62  ;;  %v129_v8 = vadd.f32 %v128_v3, %v127_v63  ;;  %v185_v2 = vpop.permute.xlu1 %184 }
  0xa7   :  { %v190_v3 = vpop.permute.xlu0 %189 }
  0xa8   :  { %v103_v9 = vrot.slane %v102_v5, 2  ;;  %v112_v10 = vrot.slane %v111_v6, 2  ;;  %v121_v11 = vrot.slane %v120_v7, 2  ;;  %v130_v12 = vrot.slane %v129_v8, 2 }
  0xaa   :  { %v104_v15 = vadd.f32 %v103_v9, %v102_v5  ;;  %v113_v16 = vadd.f32 %v112_v10, %v111_v6  ;;  %v122_v29 = vadd.f32 %v121_v11, %v120_v7  ;;  %v131_v31 = vadd.f32 %v130_v12, %v129_v8  ;;  %v195_v4 = vpop.permute.xlu1 %194 }
  0xab   :  { %v200_v5 = vpop.permute.xlu0 %199 }
  0xac   :  { %v105_v32 = vrot.slane %v104_v15, 1  ;;  %v114_v33 = vrot.slane %v113_v16, 1  ;;  %v123_v34 = vrot.slane %v122_v29, 1  ;;  %v132_v35 = vrot.slane %v131_v31, 1 }
  0xae   :  { %v106_v40 = vadd.f32 %v105_v32, %v104_v15  ;;  %v115_v41 = vadd.f32 %v114_v33, %v113_v16  ;;  %v124_v42 = vadd.f32 %v123_v34, %v122_v29  ;;  %v133_v43 = vadd.f32 %v132_v35, %v131_v31 }
  0xb0   :  { %v144_v44 = vadd.f32 %v143_v39, %v106_v40  ;;  %v145_v45 = vadd.f32 %v143_v39, %v115_v41  ;;  %v146_v46 = vadd.f32 %v143_v39, %v124_v42  ;;  %v147_v47 = vadd.f32 %v143_v39, %v133_v43 }
  0xb2   :  { %v148_v48 = vsub.f32 0.0, %v144_v44  ;;  %v149_v49 = vsub.f32 0.0, %v145_v45  ;;  %v150_v50 = vsub.f32 0.0, %v146_v46  ;;  %v151_v51 = vsub.f32 0.0, %v147_v47  ;;  %v205_v44 = vpop.permute.xlu1 %204 }
  0xb4   :  { %v152_v52 = vmul.f32 1.442695, %v148_v48  ;;  %v154_v53 = vmul.f32 1.442695, %v149_v49  ;;  %v156_v54 = vmul.f32 1.442695, %v150_v50 }
  0xb5   :  { %v158_v55 = vmul.f32 1.442695, %v151_v51 }
  0xb6   :  { %284 = vpow2.f32 %v152_v52 }
  0xb7   :  { %286 = vpow2.f32 %v154_v53 }
  0xb8   :  { %288 = vpow2.f32 %v156_v54 }
  0xb9   :  { %290 = vpow2.f32 %v158_v55 }
  0xc0   :  { %v285_v56 = vpop.eup %284 }
  0xc1   :  { %v287_v59 = vpop.eup %286  ;;  %v160_v60 = vadd.f32 1.0, %v285_v56 }
  0xc2   :  { %v289_v61 = vpop.eup %288  ;;  %v161_v62 = vadd.f32 1.0, %v287_v59 }
  0xc3   :  { %v291_v63 = vpop.eup %290  ;;  %292 = vrcp.f32 %v160_v60  ;;  %v162_v0 = vadd.f32 1.0, %v289_v61 }
  0xc4   :  { %294 = vrcp.f32 %v161_v62  ;;  %v163_v1 = vadd.f32 1.0, %v291_v63 }
  0xc5   :  { %296 = vrcp.f32 %v162_v0 }
  0xc6   :  { %298 = vrcp.f32 %v163_v1 }
  0xcd   :  { %v293_v6 = vpop.eup %292 }
  0xce   :  { %v295_v7 = vpop.eup %294  ;;  %v212_v8 = vadd.f32 %v293_v6, %v175_v57  ;;  %v214_v9 = vadd.f32 %v293_v6, %v180_v58  ;;  %v216_v10 = vadd.f32 %v293_v6, %v185_v2  ;;  %v218_v11 = vadd.f32 %v293_v6, %v190_v3 }
  0xcf   :  { %v297_v12 = vpop.eup %296  ;;  %v213_v13 = vadd.f32 %v295_v7, %v175_v57  ;;  %v215_v14 = vadd.f32 %v295_v7, %v180_v58  ;;  %v217_v15 = vadd.f32 %v295_v7, %v185_v2  ;;  %v219_v16 = vadd.f32 %v295_v7, %v190_v3 }
  0xd0   :  { %v299_v29 = vpop.eup %298  ;;  %v228_v31 = vmul.f32 %v212_v8, %v434_v18  ;;  %v230_v32 = vmul.f32 %v214_v9, %v432_v17  ;;  %v232_v33 = vmul.f32 %v216_v10, %v436_v19  ;;  %v234_v34 = vmul.f32 %v218_v11, %v456_v30  ;;  %v210_v19 = vpop.permute.xlu0 %209 }
  0xd1   :  { %v229_v35 = vmul.f32 %v213_v13, %v438_v20  ;;  %v231_v39 = vmul.f32 %v215_v14, %v444_v23  ;;  %v233_v40 = vmul.f32 %v217_v15, %v450_v26  ;;  %v235_v41 = vmul.f32 %v219_v16, %v462_v36 }
  0xd2   :  { %244 = vst [vmem:[#allocation6] sm:$0xff] %v228_v31  ;;  %246 = vst [vmem:[#allocation6 + $0x10] sm:$0xff] %v230_v32  ;;  %v220_v42 = vadd.f32 %v297_v12, %v195_v4  ;;  %v221_v18 = vadd.f32 %v299_v29, %v195_v4  ;;  %v222_v43 = vadd.f32 %v297_v12, %v200_v5 }
  0xd3   :  { %248 = vst [vmem:[#allocation6 + $0x20] sm:$0xff] %v232_v33  ;;  %250 = vst [vmem:[#allocation6 + $0x30] sm:$0xff] %v234_v34  ;;  %v223_v17 = vadd.f32 %v299_v29, %v200_v5  ;;  %v224_v20 = vadd.f32 %v297_v12, %v205_v44  ;;  %v225_v23 = vadd.f32 %v299_v29, %v205_v44 }
  0xd4   :  { %245 = vst [vmem:[#allocation6 + $0x8] sm:$0xff] %v229_v35  ;;  %247 = vst [vmem:[#allocation6 + $0x18] sm:$0xff] %v231_v39  ;;  %v226_v26 = vadd.f32 %v297_v12, %v210_v19  ;;  %v227_v30 = vadd.f32 %v299_v29, %v210_v19  ;;  %v236_v36 = vmul.f32 %v220_v42, %v440_v21 }
  0xd5   :  { %249 = vst [vmem:[#allocation6 + $0x28] sm:$0xff] %v233_v40  ;;  %251 = vst [vmem:[#allocation6 + $0x38] sm:$0xff] %v235_v41  ;;  %v237_v45 = vmul.f32 %v221_v18, %v442_v22  ;;  %v238_v46 = vmul.f32 %v222_v43, %v446_v24  ;;  %v239_v47 = vmul.f32 %v223_v17, %v448_v25 }
  0xd6   :  { %v240_v48 = vmul.f32 %v224_v20, %v452_v27  ;;  %v241_v49 = vmul.f32 %v225_v23, %v454_v28  ;;  %v242_v50 = vmul.f32 %v226_v26, %v464_v37  ;;  %v243_v51 = vmul.f32 %v227_v30, %v466_v38  ;;  %252 = vst [vmem:[#allocation6 + $0x40] sm:$0xff] %v236_v36 }
  0xd7   :  { %253 = vst [vmem:[#allocation6 + $0x48] sm:$0xff] %v237_v45  ;;  %254 = vst [vmem:[#allocation6 + $0x50] sm:$0xff] %v238_v46 }
  0xd8   :  { %255 = vst [vmem:[#allocation6 + $0x58] sm:$0xff] %v239_v47  ;;  %256 = vst [vmem:[#allocation6 + $0x60] sm:$0xff] %v240_v48 }
  0xd9   :  { %257 = vst [vmem:[#allocation6 + $0x68] sm:$0xff] %v241_v49  ;;  %258 = vst [vmem:[#allocation6 + $0x70] sm:$0xff] %v242_v50 }
  0xda   :  { %259 = vst [vmem:[#allocation6 + $0x78] sm:$0xff] %v243_v51 }
  0xdb   :  { %333 = shalt.err (!%p330_p12)
}
  0xdc   :  { %s334_s5 = scalar_lea.hbm %s515_s4, 2048 }
  0xdd   :  { %p335_p13 = scmp.ne.s32.totalorder %s515_s4, %s334_s5  ;;  %p338_p0 = scmp.lt.u32.totalorder %s334_s5, %s515_s4 }
  0xdf   :  { %p340_p1 = pnand %p338_p0, %p335_p13 }
  0xe1   :  { %343 = shalt.err (!%p340_p1)
}
  0xe2   :  { %271 = dma.vmem_to_hbm [thread:$0]  %s266_s3, 2048, %s515_s4, [#allocation5], %s349_s26, %s349_s26, %s350_s27  }
  0xe3   :  { %346 = dma.done.wait [#allocation5], 2048  }
  0xe4   :  { %347 = vsyncadd [#allocation5], 4294965248 }
  0xe5   :  { %275 = vsyncpa [#allocation4], 1 }
  0xe6   :  { %276 = vsyncpa [#allocation5], 1 }

</bundles_post_ra>
